<compile_context>
chip_gen: v6e
topology: v6e:2x2x1
jax: 0.10.0
libtpu: 0.0.40
codegen_flags: <defaults>
</compile_context>

<pallas_src>
import functools

import jax
import jax.numpy as jnp
from jax import lax
from jax.experimental import pallas as pl
from jax.experimental.pallas import tpu as pltpu


def _gather_block_kernel(tok_ref, w_hbm, out_ref, sem):
    """Gather one block of T embedding rows directly into the output tile.

    tok_ref : SMEM int32[n_pad]  -- all (padded) token ids (scalar prefetch)
    w_hbm   : HBM  f32[V, D]     -- embedding table, untiled (pl.ANY)
    out_ref : VMEM f32[T, D]     -- output tile for this grid step (DMA target)
    sem     : scalar DMA semaphore
    """
    block_rows = out_ref.shape[0]
    base = pl.program_id(0) * block_rows

    # Issue all T row-gather DMAs back-to-back; they are serviced
    # concurrently, which hides the per-row HBM latency.
    def _issue(r, carry):
        tok = tok_ref[base + r]
        pltpu.make_async_copy(
            w_hbm.at[pl.ds(tok, 1), :],
            out_ref.at[pl.ds(r, 1), :],
            sem,
        ).start()
        return carry

    lax.fori_loop(0, block_rows, _issue, 0)

    # Drain: every copy has the identical (1, D) shape, so wait once per
    # issued copy using a same-shaped descriptor (indices are dummies).
    # All waits complete before the body ends, so the pipeline's output
    # writeback DMA sees a fully-populated tile.
    def _drain(r, carry):
        pltpu.make_async_copy(
            w_hbm.at[pl.ds(0, 1), :],
            out_ref.at[pl.ds(0, 1), :],
            sem,
        ).wait()
        return carry

    lax.fori_loop(0, block_rows, _drain, 0)


def _round_up(x: int, m: int) -> int:
    return (x + m - 1) // m * m


@functools.partial(jax.jit, static_argnames=("block_tokens",))
def embedding_lookup(tokens: jax.Array, weight: jax.Array,
                     *, block_tokens: int = 128) -> jax.Array:
    """tokens: [...] integer array; weight: [V, D] -> [..., D]."""
    assert block_tokens % 8 == 0, "block_tokens must be a multiple of 8"
    V, D = weight.shape
    lead_shape = tokens.shape

    flat = tokens.reshape(-1).astype(jnp.int32)   # mirrors tokens.long()
    flat = jnp.clip(flat, 0, V - 1)               # never drive an OOB HBM DMA
    n = flat.shape[0]

    # Tokens per grid step: multiple of 8 (sublane-aligned), capped at
    # block_tokens; if everything fits in one block we use a single grid step.
    T = min(block_tokens, _round_up(n, 8))
    n_pad = _round_up(n, T)
    if n_pad != n:
        flat = jnp.pad(flat, (0, n_pad - n))      # pad with id 0 (valid row)
    grid = n_pad // T

    grid_spec = pltpu.PrefetchScalarGridSpec(
        num_scalar_prefetch=1,
        grid=(grid,),
        in_specs=[pl.BlockSpec(memory_space=pl.ANY)],   # table stays in HBM
        out_specs=pl.BlockSpec((T, D), lambda i, tok: (i, 0)),
        scratch_shapes=[
            pltpu.SemaphoreType.DMA(()),
        ],
    )

    out = pl.pallas_call(
        _gather_block_kernel,
        out_shape=jax.ShapeDtypeStruct((n_pad, D), weight.dtype),
        grid_spec=grid_spec,
        compiler_params=pltpu.CompilerParams(
            dimension_semantics=("parallel",),          # megacore split on v7x
        ),
    )(flat, weight)

    return out[:n].reshape(*lead_shape, D)


class EmbeddingLayerPallas:
    """JAX/Pallas equivalent of EmbeddingLayer."""

    def __init__(self, vocab_size: int, embed_dim: int, key: jax.Array):
        self.embed_dim = embed_dim
        # nn.Embedding default init: weight ~ N(0, 1); kept float32 to match
        # the PyTorch module's numerics bit-exactly.
        self.weight = jax.random.normal(
            key, (vocab_size, embed_dim), dtype=jnp.float32
        )
        # TODO(synk): pretrained-embedding loading from .npy is file I/O; out of
        # scope for this synthetic kernel.

    def __call__(self, input_dict):
        tokens = input_dict["text"]
        return embedding_lookup(tokens, self.weight)


if __name__ == "__main__":
    vocab_size = 100
    embed_dim = 32
    batch, seq = 2, 8

    key = jax.random.PRNGKey(0)
    k_w, k_tok = jax.random.split(key)

    layer = EmbeddingLayerPallas(vocab_size, embed_dim, k_w)
    tokens = jax.random.randint(k_tok, (batch, seq), 0, vocab_size, dtype=jnp.int32)

    embs = layer({"text": tokens})
    embs = jax.block_until_ready(embs)

    # Reference check against plain JAX gather (the kernel is an exact copy).
    ref = jnp.take(layer.weight, tokens.reshape(-1), axis=0).reshape(
        batch, seq, embed_dim
    )
    assert embs.shape == (batch, seq, embed_dim)
    assert jnp.allclose(embs, ref), "mismatch vs reference gather"

    print("KERNEL_OK")
</pallas_src>

<mosaic_0001>
module attributes {stable_mosaic.version = 11 : i64} {
  func.func @_gather_block_kernel(%arg0: i32, %arg1: memref<16xi32, #tpu.memory_space<smem>>, %arg2: memref<100x32xf32, #tpu.memory_space<any>>, %arg3: memref<16x32xf32, #tpu.memory_space<vmem>>, %arg4: memref<!tpu.dma_semaphore, #tpu.memory_space<semaphore_mem>>) attributes {dimension_semantics = [#tpu.dimension_semantics<parallel>], iteration_bounds = array<i64: 1>, scalar_prefetch = 1 : i64, scratch_operands = 1 : i64, tpu.core_type = #tpu.core_type<tc>, window_params = [{}, {transform_indices = @transform_1, window_bounds = array<i64: 16, 32>}]} {
    %c16_i32 = arith.constant 16 : i32
    %0 = arith.muli %arg0, %c16_i32 : i32
    %c0_i32 = arith.constant 0 : i32
    %c16_i32_0 = arith.constant 16 : i32
    %1 = arith.addi %c0_i32, %c16_i32_0 : i32
    %c1_i32 = arith.constant 1 : i32
    scf.for %arg5 = %c0_i32 to %1 step %c1_i32  : i32 {
      %3 = arith.addi %0, %arg5 : i32
      %4 = arith.index_cast %3 : i32 to index
      %5 = memref.load %arg1[%4] : memref<16xi32, #tpu.memory_space<smem>>
      %c0_i32_5 = arith.constant 0 : i32
      %6 = tpu.memref_slice %arg2[%5, %c0_i32_5] : memref<100x32xf32, #tpu.memory_space<any>> -> memref<1x32xf32, #tpu.memory_space<any>>
      %c0_i32_6 = arith.constant 0 : i32
      %7 = tpu.memref_slice %arg3[%arg5, %c0_i32_6] : memref<16x32xf32, #tpu.memory_space<vmem>> -> memref<1x32xf32, #tpu.memory_space<vmem>>
      tpu.enqueue_dma source(%6 : memref<1x32xf32, #tpu.memory_space<any>>) target(%7 : memref<1x32xf32, #tpu.memory_space<vmem>>) target_semaphore(%arg4 : memref<!tpu.dma_semaphore, #tpu.memory_space<semaphore_mem>>)
    }
    %c16_i32_1 = arith.constant 16 : i32
    %c0_i32_2 = arith.constant 0 : i32
    %c16_i32_3 = arith.constant 16 : i32
    %2 = arith.addi %c0_i32_2, %c16_i32_3 : i32
    %c1_i32_4 = arith.constant 1 : i32
    scf.for %arg5 = %c0_i32_2 to %2 step %c1_i32_4  : i32 {
      %c0_i32_5 = arith.constant 0 : i32
      %c0_i32_6 = arith.constant 0 : i32
      %3 = tpu.memref_slice %arg2[%c0_i32_5, %c0_i32_6] : memref<100x32xf32, #tpu.memory_space<any>> -> memref<1x32xf32, #tpu.memory_space<any>>
      %c0_i32_7 = arith.constant 0 : i32
      %c0_i32_8 = arith.constant 0 : i32
      %4 = tpu.memref_slice %arg3[%c0_i32_7, %c0_i32_8] : memref<16x32xf32, #tpu.memory_space<vmem>> -> memref<1x32xf32, #tpu.memory_space<vmem>>
      tpu.wait_dma2 semaphore(%arg4 : memref<!tpu.dma_semaphore, #tpu.memory_space<semaphore_mem>>) src(%3 : memref<1x32xf32, #tpu.memory_space<any>>) dst(%4 : memref<1x32xf32, #tpu.memory_space<vmem>>)
    }
    return
  }
  func.func @transform_1(%arg0: i32, %arg1: memref<16xi32, #tpu.memory_space<smem>>) -> (i32, i32) {
    %c0_i32 = arith.constant 0 : i32
    %c0_i32_0 = arith.constant 0 : i32
    return %arg0, %c0_i32 : i32, i32
  }
}

</mosaic_0001>

<bundles_post_ra>
// kernel: embedding_lookup.1
= control target key start
LH: loop header
LB: loop body
LE: loop exit
PB: predicated region body
PF: predicated region fallthrough
CT: control target
= control target key end

     0   :  { %s227_s0 = inlined_call_operand.vmem [shape: s32[16], index: 0, kind: input, shape index: {}]   ;;  %s228_s1 = inlined_call_operand.vmem [shape: f32[100,32], index: 1, kind: input, shape index: {}]   ;;  %s229_s2 = inlined_call_operand.hbm [shape: f32[16,32], index: 2, kind: output, shape index: {}]  }
   0x1   :  { %s7_s11 = sshll.u32 %s227_s0, 4  ;;  %s8_s11 = int_to_ptr.vmem [resolvable:$true] %s7_s11 }
   0x2   :  { %s145_s12 = scalar_lea.vmem %s8_s11, 16  ;;  %p150_p1 = scmp.lt.s32.totalorder %s8_s11, %s8_s11 }
   0x3   :  { %p146_p0 = scmp.ne.s32.totalorder %s8_s11, %s145_s12  ;;  %p151_p2 = scmp.lt.s32.totalorder %s145_s12, %s145_s12 }
   0x5   :  { %p152_p3 = por %p151_p2, %p150_p1 }
   0x7   :  { %p153_p4 = pnand %p152_p3, %p146_p0 }
   0x9   :  { %156 = shalt.err (!%p153_p4)  }
   0xa   :  { %s199_s13 = smov [#allocation4]  }
   0xb   :  { %10 = dma.vmem_to_smem %s8_s11, 16, %s199_s13, [#allocation3] }
   0xc   :  { %185 = dma.done.wait [#allocation3], 16 }
   0xd   :  { %186 = vsyncadd [#allocation3], 4294967280 }
   0xe   :  { %12 = sfence }
   0xf   :  { %13 = vsyncpa [#allocation6], 0  ;;  %s191_s14 = smov 0  }
  0x10 LB: > { %s22_s15 = sld [smem:[#allocation4 + %s193_s14]]  ;;  %s24_s18 = scalar_lea.vmem [#allocation5], %s193_s14  ;;  %s193_s14 = sphi %s191_s14, %s20_s14  }
  0x16   : > { %s23_s17 = scalar_lea.vmem %s228_s1, %s22_s15 }
  0x17   : > { %v43_v0 = vld [vmem:[%s23_s17] sm:$0x1] }
  0x18   : > { %44 = vst [vmem:[%s24_s18] sm:$0x1] %v43_v0 }
  0x19   : > { %70 = vsyncadd [#allocation2], 16  ;;  %s20_s14 = sadd.s32 1, %s193_s14  }
  0x1a   : > { %p17_p5 = scmp.ge.s32.totalorder %s20_s14, 16  }
  0x1b   :  { %s195_s19 = smov (%p17_p5), 0  }
  0x1c   :  { %19 = sbr.rel (!%p17_p5) target bundleno = 16 (0x10), region = 76 }
  0x21 LB: > { %187 = dma.done.wait [#allocation2], 16  ;;  %s197_s19 = sphi %s195_s19, %s76_s19  }
  0x22   : > { %188 = vsyncadd [#allocation2], 4294967280  ;;  %s76_s19 = sadd.s32 1, %s197_s19  }
  0x23   : > { %p73_p6 = scmp.ge.s32.totalorder %s76_s19, 16  }
  0x24   :  { %s200_s20 = smov (%p73_p6), [#allocation5]  }
  0x25   :  { %75 = sbr.rel (!%p73_p6) target bundleno = 33 (0x21), region = 87  ;;  %s85_s21 = sshll.u32 (%p73_p6), %s200_s20, 4  ;;  %s86_s21 = int_to_ptr.vmem [resolvable:$true] %s85_s21 }
  0x26   :  { %s157_s22 = scalar_lea.vmem (%p73_p6), %s86_s21, 256  ;;  %p162_p8 = scmp.lt.s32.totalorder (%p73_p6), %s86_s21, %s86_s21 }
  0x27   :  { %p158_p7 = scmp.ne.s32.totalorder (%p73_p6), %s86_s21, %s157_s22  ;;  %p163_p9 = scmp.lt.s32.totalorder (%p73_p6), %s157_s22, %s157_s22 }
  0x29   :  { %p164_p10 = por (%p73_p6), %p163_p9, %p162_p8 }
  0x2b   :  { %p165_p11 = pnand %p164_p10, %p158_p7 }
  0x2d   :  { %168 = shalt.err (!%p165_p11)
}
  0x2e   :  { %s201_s1 = smov 128   ;;  %s202_s23 = smov 8  }
  0x2f   :  { %91 = dma.vmem_to_hbm [thread:$0]  %s86_s21, 256, %s229_s2, [#allocation6], %s201_s1, %s201_s1, %s202_s23  }
  0x30   :  { %189 = dma.done.wait [#allocation6], 256  }
  0x31   :  { %190 = vsyncadd [#allocation6], 4294967040 }
  0x32   :  { %95 = vsyncpa [#allocation6], 1 }
  0x33   :  { %96 = vsyncmov [#allocation2] }
  0x36   :  { %s97_s26 = vpop.sfrf %96 }
  0x37   :  { %p124_p12 = scmp.ne.s32.totalorder %s97_s26, 0 }
  0x39   :  { %101 = shalt.err (%p124_p12)  }

</bundles_post_ra>
